<compile_context>
chip_gen: v6e
topology: v6e:2x2x1
jax: 0.10.0
libtpu: 0.0.40
codegen_flags: <defaults>
</compile_context>

<pallas_src>
import jax
import jax.numpy as jnp
from jax.experimental import pallas as pl
from jax.experimental.pallas import tpu as pltpu


def _tanh_kernel(z_ref, o_ref):
    # One EUP transcendental per element; stable for large |z| (matches torch.nn.Tanh).
    z = z_ref[...]
    o_ref[...] = jnp.tanh(z.astype(jnp.float32)).astype(o_ref.dtype)


_TARGET_BLOCK_BYTES = 2 * 1024 * 1024  # ~2 MiB input block: roofline knee, VMEM-safe everywhere


def _sublane(dtype):
    # Rows per packed vreg sublane group: 8 for f32, 16 for bf16/f16, 32 for int8/fp8.
    return max(8, 32 // jnp.dtype(dtype).itemsize)


def _tanh_2d(x2):
    """tanh over a (rows, cols) array; cols is a multiple of 128 (lane-dense stores)."""
    rows, cols = x2.shape
    itemsize = jnp.dtype(x2.dtype).itemsize
    sub = _sublane(x2.dtype)

    tile_rows = max(sub, _TARGET_BLOCK_BYTES // (cols * itemsize))
    if rows >= 2 * sub:
        # Cap the block so the grid has >= 2 steps: v7x's two TensorCores each take half.
        cap = (rows // 2) // sub * sub
        tile_rows = min(tile_rows, cap)
        tile_rows = max(sub, tile_rows - (tile_rows % sub))  # dtype-aligned sublane rounding
    else:
        tile_rows = rows  # tiny tensor: single full-extent block (no (8,128) constraint)

    grid = (pl.cdiv(rows, tile_rows),)  # ragged last block handled by Pallas
    n = rows * cols
    cost = pl.CostEstimate(
        flops=2 * n, transcendentals=n, bytes_accessed=2 * n * itemsize
    )

    return pl.pallas_call(
        _tanh_kernel,
        out_shape=jax.ShapeDtypeStruct((rows, cols), x2.dtype),
        grid_spec=pltpu.PrefetchScalarGridSpec(
            num_scalar_prefetch=0,
            grid=grid,
            in_specs=[pl.BlockSpec((tile_rows, cols), lambda i: (i, 0))],
            out_specs=pl.BlockSpec((tile_rows, cols), lambda i: (i, 0)),
        ),
        compiler_params=pltpu.CompilerParams(
            dimension_semantics=("parallel",),
        ),
        cost_estimate=cost,
    )(x2)


def tanh(z, *, max_lane_cols=512):
    """Elementwise tanh of z (any shape) via a lane-dense streaming Pallas TPU kernel."""
    orig_shape = z.shape
    flat = z.reshape(-1)
    n = flat.shape[0]
    if n == 0:
        return z

    # Pick a lane-dense column width (multiple of 128) that divides n, if possible.
    cols = None
    for c in (max_lane_cols, 256, 128):
        if n % c == 0:
            cols = c
            break

    if cols is not None:
        out = _tanh_2d(flat.reshape(n // cols, cols))  # contiguous reshape: no HBM copy
        return out.reshape(orig_shape)

    # Ragged total size: kernel on the 128-aligned prefix, plain tanh on the <128-elem
    # tail, then concatenate.  Avoids a full-tensor pad copy (extra HBM read+write).
    n_main = (n // 128) * 128
    if n_main == 0:
        return jnp.tanh(flat).reshape(orig_shape)  # tensor smaller than one vector row
    head = _tanh_2d(flat[:n_main].reshape(n_main // 128, 128)).reshape(-1)
    tail = jnp.tanh(flat[n_main:])
    return jnp.concatenate([head, tail]).reshape(orig_shape)


if __name__ == "__main__":
    key = jax.random.PRNGKey(0)

    # Small shape consistent with the module's usage: batch=2, seq=8, hidden=32.
    x = jax.random.normal(key, (2, 8, 32), dtype=jnp.float32)
    y = jax.block_until_ready(tanh(x))

    # Reference: exactly the module's formula (== tanh for these magnitudes).
    ref = (jnp.exp(x) - jnp.exp(-x)) / (jnp.exp(x) + jnp.exp(-x))
    assert jnp.allclose(y, ref, atol=1e-6, rtol=1e-6), "mismatch vs exp-formula reference"
    assert jnp.allclose(y, jnp.tanh(x), atol=1e-6, rtol=1e-6), "mismatch vs jnp.tanh"

    # Non-lane-aligned shape exercises the prefix+tail ragged path.
    x2 = jax.random.normal(jax.random.PRNGKey(1), (3, 7, 33), dtype=jnp.float32)
    y2 = jax.block_until_ready(tanh(x2))
    assert jnp.allclose(y2, jnp.tanh(x2), atol=1e-6, rtol=1e-6), "mismatch on ragged shape"

    # Large |z|: no overflow/NaN (torch.nn.Tanh behavior of +/-1).
    x3 = jnp.array([[-200.0] * 64 + [200.0] * 64], dtype=jnp.float32)
    y3 = jax.block_until_ready(tanh(x3))
    assert jnp.allclose(y3, jnp.tanh(x3), atol=1e-6, rtol=1e-6), "mismatch at large |z|"

    print("KERNEL_OK")
</pallas_src>

<mosaic_0001>
module attributes {stable_mosaic.version = 11 : i64} {
  func.func @_tanh_kernel(%arg0: i32, %arg1: memref<1x512xf32, #tpu.memory_space<vmem>>, %arg2: memref<1x512xf32, #tpu.memory_space<vmem>>) attributes {dimension_semantics = [#tpu.dimension_semantics<parallel>], iteration_bounds = array<i64: 1>, scalar_prefetch = 0 : i64, scratch_operands = 0 : i64, tpu.core_type = #tpu.core_type<tc>, window_params = [{transform_indices = @transform_0, window_bounds = array<i64: 1, 512>}, {transform_indices = @transform_1, window_bounds = array<i64: 1, 512>}]} {
    %c0 = arith.constant 0 : index
    %c0_0 = arith.constant 0 : index
    %0 = vector.load %arg1[%c0, %c0_0] : memref<1x512xf32, #tpu.memory_space<vmem>>, vector<1x512xf32>
    %1 = math.tanh %0 : vector<1x512xf32>
    %c0_1 = arith.constant 0 : index
    %c0_2 = arith.constant 0 : index
    %2 = vector.load %arg2[%c0_1, %c0_2] : memref<1x512xf32, #tpu.memory_space<vmem>>, vector<1x512xf32>
    tpu.vector_store %arg2[%c0_1, %c0_2], %1 {strides = array<i32>} : memref<1x512xf32, #tpu.memory_space<vmem>>, vector<1x512xf32>,
    return
  }
  func.func @transform_0(%arg0: i32) -> (i32, i32) {
    %c0_i32 = arith.constant 0 : i32
    %c0_i32_0 = arith.constant 0 : i32
    return %arg0, %c0_i32 : i32, i32
  }
  func.func @transform_1(%arg0: i32) -> (i32, i32) {
    %c0_i32 = arith.constant 0 : i32
    %c0_i32_0 = arith.constant 0 : i32
    return %arg0, %c0_i32 : i32, i32
  }
}

</mosaic_0001>

<bundles_post_ra>
// kernel: tpu_custom_call.1
= control target key start
LH: loop header
LB: loop body
LE: loop exit
PB: predicated region body
PF: predicated region fallthrough
CT: control target
= control target key end

     0   :  { %6 = vsyncpa [#allocation3], 0  ;;  %s109_s0 = inlined_call_operand.hbm [shape: f32[1,512], index: 0, kind: input, shape index: {}]   ;;  %s110_s1 = inlined_call_operand.hbm [shape: f32[1,512], index: 1, kind: output, shape index: {}]  }
   0x1   :  { %7 = vsyncpa [#allocation4], 0  ;;  %s91_s6 = smov [#allocation2]  }
   0x2   :  { %s14_s7 = sshll.u32 %s91_s6, 4  ;;  %s15_s7 = int_to_ptr.vmem [resolvable:$true] %s14_s7 }
   0x3   :  { %s55_s8 = scalar_lea.vmem %s15_s7, 64  ;;  %p60_p1 = scmp.lt.s32.totalorder %s15_s7, %s15_s7 }
   0x4   :  { %p56_p0 = scmp.ne.s32.totalorder %s15_s7, %s55_s8  ;;  %p61_p2 = scmp.lt.s32.totalorder %s55_s8, %s55_s8 }
   0x6   :  { %p62_p3 = por %p61_p2, %p60_p1 }
   0x8   :  { %p63_p4 = pnand %p62_p3, %p56_p0 }
   0xa   :  { %66 = shalt.err (!%p63_p4)
}
   0xb   :  { %17 = dma.hbm_to_vmem [thread:$0]  %s109_s0, 64, %s15_s7, [#allocation3]  }
   0xc   :  { %87 = dma.done.wait [#allocation3], 64  }
   0xd   :  { %88 = vsyncadd [#allocation3], 4294967232  ;;  %v21_v0 = vld [vmem:[#allocation2] sm:$0xf]  ;;  %v23_v1 = vlaneseq  ;;  %s92_s11 = smov [#allocation5]  }
   0xe   :  { %45 = vtanh.f32 %v21_v0  ;;  %s34_s12 = sshll.u32 %s92_s11, 4  ;;  %s35_s12 = int_to_ptr.vmem [resolvable:$true] %s34_s12 }
   0xf   :  { %vm25_vm0 = vcmp.lt.s32.totalorder %v23_v1, 512  ;;  %s67_s13 = scalar_lea.vmem %s35_s12, 64  ;;  %p72_p6 = scmp.lt.s32.totalorder %s35_s12, %s35_s12 }
  0x10   :  { %p68_p5 = scmp.ne.s32.totalorder %s35_s12, %s67_s13  ;;  %p73_p7 = scmp.lt.s32.totalorder %s67_s13, %s67_s13 }
  0x12   :  { %p74_p8 = por %p73_p7, %p72_p6 }
  0x14   :  { %p75_p9 = pnand %p74_p8, %p68_p5 }
  0x1b   :  { %v46_v2 = vpop.eup %45 }
  0x1c   :  { %27 = vst.msk [vmem:[#allocation5] sm:$0xf] %vm25_vm0, %v46_v2 }
  0x1d   :  { %78 = shalt.err (!%p75_p9)
}
  0x1e   :  { %37 = dma.vmem_to_hbm [thread:$0]  %s35_s12, 64, %s110_s1, [#allocation4]  }
  0x1f   :  { %89 = dma.done.wait [#allocation4], 64  }
  0x20   :  { %90 = vsyncadd [#allocation4], 4294967232 }
  0x21   :  { %41 = vsyncpa [#allocation3], 1 }
  0x22   :  { %42 = vsyncpa [#allocation4], 1 }

</bundles_post_ra>
